<compile_context>
chip_gen: v6e
topology: v6e:2x2x1
jax: 0.10.0
libtpu: 0.0.40
codegen_flags: <defaults>
</compile_context>

<pallas_src>
import functools
import math

import jax
import jax.numpy as jnp
from jax.experimental import pallas as pl
from jax.experimental.pallas import tpu as pltpu


def _loss_kernel(o1_ref, o2_ref, lbl_ref, out_ref,
                 s1_ref, q1_ref, l1_ref, s2_ref, q2_ref, l2_ref, d_ref, *,
                 contrastive_margin, cos_m, sin_m, arc_scale,
                 n_rows, n_cols, tile_rows, tile_cols):
    i = pl.program_id(0)                 # row tile   (parallel)
    j = pl.program_id(1)                 # class tile (arbitrary, innermost)
    n_j = pl.num_programs(1)

    @pl.when(j == 0)
    def _():
        for r in (s1_ref, q1_ref, l1_ref, s2_ref, q2_ref, l2_ref, d_ref):
            r[...] = jnp.zeros_like(r)

    o1 = o1_ref[...].astype(jnp.float32)                # (TB, TC)
    o2 = o2_ref[...].astype(jnp.float32)                # (TB, TC)
    lbl = lbl_ref[...]                                  # (TB, 1) int32
    tb, tc = o1.shape

    # Global class ids of this tile's columns (for the label one-hot / col masking).
    col_ids = j * tile_cols + jax.lax.broadcasted_iota(jnp.int32, (tb, tc), 1)

    if n_cols % tile_cols != 0:
        # Last class tile extends past C: zero the padded columns out.
        col_valid = col_ids < n_cols
        o1 = jnp.where(col_valid, o1, 0.0)
        o2 = jnp.where(col_valid, o2, 0.0)

    margin_mask = col_ids == lbl                        # one-hot; lbl == -1 never hits

    # Streaming per-row partial reductions over this class tile.
    diff = o2 - o1
    d_ref[...] += jnp.sum(diff * diff, axis=1, keepdims=True)
    s1_ref[...] += jnp.sum(o1, axis=1, keepdims=True)
    q1_ref[...] += jnp.sum(o1 * o1, axis=1, keepdims=True)
    l1_ref[...] += jnp.sum(jnp.where(margin_mask, o1, 0.0), axis=1, keepdims=True)
    s2_ref[...] += jnp.sum(o2, axis=1, keepdims=True)
    q2_ref[...] += jnp.sum(o2 * o2, axis=1, keepdims=True)
    l2_ref[...] += jnp.sum(jnp.where(margin_mask, o2, 0.0), axis=1, keepdims=True)

    @pl.when(j == n_j - 1)
    def _():
        dist = d_ref[...]                               # (TB, 1)
        # NOTE: the raw class label is used as the pairwise target t, exactly as in
        # the PyTorch module (t is NOT clamped to {0, 1}).
        t = lbl.astype(jnp.float32)
        hinge = jnp.maximum(contrastive_margin - jnp.sqrt(dist), 0.0)
        row_con = 0.5 * (t * dist + (1.0 - t) * hinge * hinge)

        valid_lbl = (lbl != -1).astype(jnp.float32)

        def arc_rows(s, q, lab):
            # ArcFace collapsed algebraically: only the label column shifts, so the
            # row sum of the scaled matrix is scale*(S/||x|| + valid*(cos(acos(c)+m)-c))
            # with c = x[label]/||x||.  (Divergence from torch: where torch's acos
            # would NaN on |x/||x|| - 1| rounding above 1, this closed form clamps
            # 1-c^2 at 0 and stays finite.)
            inv = jax.lax.rsqrt(jnp.maximum(q, 1e-24))  # == 1 / max(||x||, 1e-12)
            c = lab * inv
            shifted = c * cos_m - jnp.sqrt(jnp.maximum(1.0 - c * c, 0.0)) * sin_m
            return arc_scale * (s * inv + valid_lbl * (shifted - c))

        row_arc = (arc_rows(s1_ref[...], q1_ref[...], l1_ref[...])
                   + arc_rows(s2_ref[...], q2_ref[...], l2_ref[...]))

        row_total = (row_con * (1.0 / n_rows)
                     + row_arc * (0.5 / (n_rows * n_cols)))

        if n_rows % tile_rows != 0:
            # Last row tile extends past B: drop the padded rows.
            row_ids = jax.lax.broadcasted_iota(jnp.int32, (tb, 1), 0)
            row_total = jnp.where(i * tile_rows + row_ids < n_rows, row_total, 0.0)

        partial = jnp.sum(row_total, keepdims=True)     # (1, 1) per row tile
        out_ref[...] = jnp.broadcast_to(partial[None], out_ref.shape)


def _vmem_bytes():
    try:
        return int(pltpu.get_tpu_info().vmem_capacity_bytes)
    except Exception:
        return 64 * 1024 * 1024          # conservative (v7x-sized) fallback


def _pick_tiles(b, c, itemsize):
    phys = _vmem_bytes()
    # ~55% of physical VMEM for double-buffered o1/o2 blocks + live f32 temporaries
    # (masks, products); leaves headroom for scratch / compiler spill.
    budget = (phys * 11) // 20
    per_elem = 2 * 2 * itemsize + 4 * 4   # 2 inputs x 2 pipeline bufs + ~4 f32 temps
    sub = {1: 32, 2: 16}.get(itemsize, 8) # dtype-aware sublane alignment

    tc = c if c <= 2048 else 2048         # lane tile: full C when small, else 128-mult chunk
    cap = max(sub, budget // (per_elem * tc))
    tb = min(b, 1024, cap)
    if tb < b:
        tb = max(sub, (tb // sub) * sub)  # aligned tile; last tile is row-masked
    else:
        tb = b                            # full-extent block is always legal

    vmem_limit = min((phys * 17) // 20, 112 * 1024 * 1024)
    return tb, tc, vmem_limit


def loss_fn(output1, output2, target,
            contrastive_margin=1.0, arc_margin=0.5, arc_scale=30.0,
            tile_override=None):
    B, C = output1.shape
    # Glue: target arrives as (1, B) like the PyTorch module; flatten to (B, 1).
    lbl = target.reshape(B, 1).astype(jnp.int32)

    itemsize = jnp.dtype(output1.dtype).itemsize
    tb, tc, vmem_limit = _pick_tiles(B, C, itemsize)
    if tile_override is not None:
        tb, tc = tile_override

    num_row_tiles = pl.cdiv(B, tb)
    num_col_tiles = pl.cdiv(C, tc)

    kernel = functools.partial(
        _loss_kernel,
        contrastive_margin=float(contrastive_margin),
        cos_m=float(math.cos(arc_margin)),
        sin_m=float(math.sin(arc_margin)),
        arc_scale=float(arc_scale),
        n_rows=B, n_cols=C, tile_rows=tb, tile_cols=tc,
    )

    # TODO(synk): for very small per-step blocks (huge C forcing short row tiles),
    # sweep pipeline_mode=pl.Buffered(3) on the two feature inputs.
    out = pl.pallas_call(
        kernel,
        out_shape=jax.ShapeDtypeStruct((num_row_tiles, 8, 128), jnp.float32),
        grid_spec=pltpu.PrefetchScalarGridSpec(
            num_scalar_prefetch=0,
            grid=(num_row_tiles, num_col_tiles),
            in_specs=[
                pl.BlockSpec((tb, tc), lambda i, j: (i, j)),
                pl.BlockSpec((tb, tc), lambda i, j: (i, j)),
                pl.BlockSpec((tb, 1), lambda i, j: (i, 0)),
            ],
            # Lane-dense per-row-tile partial; index depends only on i, so the block
            # stays resident across the class axis and is written once at j == last.
            out_specs=pl.BlockSpec((1, 8, 128), lambda i, j: (i, 0, 0)),
            scratch_shapes=[pltpu.VMEM((tb, 1), jnp.float32) for _ in range(7)],
        ),
        compiler_params=pltpu.CompilerParams(
            dimension_semantics=("parallel", "arbitrary"),
            vmem_limit_bytes=vmem_limit,
        ),
    )(output1, output2, lbl)

    return jnp.sum(out[:, 0, 0])


def reference_loss(output1, output2, target, cm, am, s):
    # Pure-JAX mirror of the PyTorch module (uses arccos/cos literally).
    d = jnp.sum((output2 - output1) ** 2, axis=1)                  # (B,)
    t = target.astype(jnp.float32)                                 # (1, B)
    losses = 0.5 * (t * d + (1.0 - t) * jnp.maximum(cm - jnp.sqrt(d), 0.0) ** 2)
    contrastive = losses.mean()

    lbl = target.reshape(-1)
    C = output1.shape[1]

    def arc(x):
        xn = x / jnp.maximum(
            jnp.sqrt(jnp.sum(x * x, axis=-1, keepdims=True)), 1e-12)
        m_hot = jnp.where(
            (lbl[:, None] != -1) & (jnp.arange(C)[None, :] == lbl[:, None]),
            am, 0.0)
        return jnp.cos(jnp.arccos(xn) + m_hot) * s

    arcface = (arc(output1) + arc(output2)).mean()
    return contrastive + 0.5 * arcface


if __name__ == "__main__":
    key = jax.random.PRNGKey(0)

    # --- test 1: small single-tile case (B=8, C=32), f32, default tiling ---
    B, C = 8, 32
    k1, k2, k3 = jax.random.split(key, 3)
    output1 = jax.random.normal(k1, (B, C), dtype=jnp.float32)
    output2 = jax.random.normal(k2, (B, C), dtype=jnp.float32)
    target = jax.random.randint(k3, (1, B), 0, C, dtype=jnp.int32)
    target = target.at[0, 0].set(-1)   # exercise the valid-label mask

    loss = jax.block_until_ready(loss_fn(output1, output2, target, 1.0, 0.5, 30.0))
    ref = reference_loss(output1, output2, target, 1.0, 0.5, 30.0)
    assert jnp.allclose(loss, ref, atol=5e-3, rtol=1e-4), (loss, ref)

    # --- test 2: multi-tile path with row + column padding (forced small tiles) ---
    B2, C2 = 20, 160
    k4, k5, k6 = jax.random.split(k3, 3)
    o1b = jax.random.normal(k4, (B2, C2), dtype=jnp.float32)
    o2b = jax.random.normal(k5, (B2, C2), dtype=jnp.float32)
    tgt2 = jax.random.randint(k6, (1, B2), 0, C2, dtype=jnp.int32)
    tgt2 = tgt2.at[0, 3].set(-1)

    loss2 = jax.block_until_ready(
        loss_fn(o1b, o2b, tgt2, 1.0, 0.5, 30.0, tile_override=(8, 128)))
    ref2 = reference_loss(o1b, o2b, tgt2, 1.0, 0.5, 30.0)
    assert jnp.allclose(loss2, ref2, atol=5e-3, rtol=1e-4), (loss2, ref2)

    # --- test 3: bf16 inputs accepted end-to-end (kernel upcasts to f32) ---
    loss3 = jax.block_until_ready(
        loss_fn(output1.astype(jnp.bfloat16), output2.astype(jnp.bfloat16),
                target, 1.0, 0.5, 30.0))
    ref3 = reference_loss(output1.astype(jnp.bfloat16).astype(jnp.float32),
                          output2.astype(jnp.bfloat16).astype(jnp.float32),
                          target, 1.0, 0.5, 30.0)
    assert jnp.allclose(loss3, ref3, atol=5e-3, rtol=1e-3), (loss3, ref3)

    print("KERNEL_OK")
</pallas_src>

<mosaic_0001>
module attributes {stable_mosaic.version = 11 : i64} {
  func.func @_loss_kernel(%arg0: i32, %arg1: i32, %arg2: memref<8x32xf32, #tpu.memory_space<vmem>>, %arg3: memref<8x32xf32, #tpu.memory_space<vmem>>, %arg4: memref<8x1xi32, #tpu.memory_space<vmem>>, %arg5: memref<1x8x128xf32, #tpu.memory_space<vmem>>, %arg6: memref<8x1xf32, #tpu.memory_space<vmem>>, %arg7: memref<8x1xf32, #tpu.memory_space<vmem>>, %arg8: memref<8x1xf32, #tpu.memory_space<vmem>>, %arg9: memref<8x1xf32, #tpu.memory_space<vmem>>, %arg10: memref<8x1xf32, #tpu.memory_space<vmem>>, %arg11: memref<8x1xf32, #tpu.memory_space<vmem>>, %arg12: memref<8x1xf32, #tpu.memory_space<vmem>>) attributes {dimension_semantics = [#tpu.dimension_semantics<parallel>, #tpu.dimension_semantics<arbitrary>], iteration_bounds = array<i64: 1, 1>, scalar_prefetch = 0 : i64, scratch_operands = 7 : i64, tpu.core_type = #tpu.core_type<tc>, window_params = [{transform_indices = @transform_0, window_bounds = array<i64: 8, 32>}, {transform_indices = @transform_1, window_bounds = array<i64: 8, 32>}, {transform_indices = @transform_2, window_bounds = array<i64: 8, 1>}, {transform_indices = @transform_3, window_bounds = array<i64: 1, 8, 128>}]} {
    %c0_i32 = arith.constant 0 : i32
    %0 = arith.cmpi eq, %arg1, %c0_i32 : i32
    %1 = arith.extui %0 : i1 to i32
    %c0_i32_0 = arith.constant 0 : i32
    %2 = arith.cmpi ne, %1, %c0_i32_0 : i32
    scf.if %2 {
      %cst_44 = arith.constant 0.000000e+00 : f32
      %58 = vector.broadcast %cst_44 : f32 to vector<8x1xf32>
      %c0_45 = arith.constant 0 : index
      %c0_46 = arith.constant 0 : index
      %59 = vector.load %arg6[%c0_45, %c0_46] : memref<8x1xf32, #tpu.memory_space<vmem>>, vector<8x1xf32>
      tpu.vector_store %arg6[%c0_45, %c0_46], %58 {strides = array<i32>} : memref<8x1xf32, #tpu.memory_space<vmem>>, vector<8x1xf32>,
      %cst_47 = arith.constant 0.000000e+00 : f32
      %60 = vector.broadcast %cst_47 : f32 to vector<8x1xf32>
      %c0_48 = arith.constant 0 : index
      %c0_49 = arith.constant 0 : index
      %61 = vector.load %arg7[%c0_48, %c0_49] : memref<8x1xf32, #tpu.memory_space<vmem>>, vector<8x1xf32>
      tpu.vector_store %arg7[%c0_48, %c0_49], %60 {strides = array<i32>} : memref<8x1xf32, #tpu.memory_space<vmem>>, vector<8x1xf32>,
      %cst_50 = arith.constant 0.000000e+00 : f32
      %62 = vector.broadcast %cst_50 : f32 to vector<8x1xf32>
      %c0_51 = arith.constant 0 : index
      %c0_52 = arith.constant 0 : index
      %63 = vector.load %arg8[%c0_51, %c0_52] : memref<8x1xf32, #tpu.memory_space<vmem>>, vector<8x1xf32>
      tpu.vector_store %arg8[%c0_51, %c0_52], %62 {strides = array<i32>} : memref<8x1xf32, #tpu.memory_space<vmem>>, vector<8x1xf32>,
      %cst_53 = arith.constant 0.000000e+00 : f32
      %64 = vector.broadcast %cst_53 : f32 to vector<8x1xf32>
      %c0_54 = arith.constant 0 : index
      %c0_55 = arith.constant 0 : index
      %65 = vector.load %arg9[%c0_54, %c0_55] : memref<8x1xf32, #tpu.memory_space<vmem>>, vector<8x1xf32>
      tpu.vector_store %arg9[%c0_54, %c0_55], %64 {strides = array<i32>} : memref<8x1xf32, #tpu.memory_space<vmem>>, vector<8x1xf32>,
      %cst_56 = arith.constant 0.000000e+00 : f32
      %66 = vector.broadcast %cst_56 : f32 to vector<8x1xf32>
      %c0_57 = arith.constant 0 : index
      %c0_58 = arith.constant 0 : index
      %67 = vector.load %arg10[%c0_57, %c0_58] : memref<8x1xf32, #tpu.memory_space<vmem>>, vector<8x1xf32>
      tpu.vector_store %arg10[%c0_57, %c0_58], %66 {strides = array<i32>} : memref<8x1xf32, #tpu.memory_space<vmem>>, vector<8x1xf32>,
      %cst_59 = arith.constant 0.000000e+00 : f32
      %68 = vector.broadcast %cst_59 : f32 to vector<8x1xf32>
      %c0_60 = arith.constant 0 : index
      %c0_61 = arith.constant 0 : index
      %69 = vector.load %arg11[%c0_60, %c0_61] : memref<8x1xf32, #tpu.memory_space<vmem>>, vector<8x1xf32>
      tpu.vector_store %arg11[%c0_60, %c0_61], %68 {strides = array<i32>} : memref<8x1xf32, #tpu.memory_space<vmem>>, vector<8x1xf32>,
      %cst_62 = arith.constant 0.000000e+00 : f32
      %70 = vector.broadcast %cst_62 : f32 to vector<8x1xf32>
      %c0_63 = arith.constant 0 : index
      %c0_64 = arith.constant 0 : index
      %71 = vector.load %arg12[%c0_63, %c0_64] : memref<8x1xf32, #tpu.memory_space<vmem>>, vector<8x1xf32>
      tpu.vector_store %arg12[%c0_63, %c0_64], %70 {strides = array<i32>} : memref<8x1xf32, #tpu.memory_space<vmem>>, vector<8x1xf32>,
    } else {
    }
    %c0 = arith.constant 0 : index
    %c0_1 = arith.constant 0 : index
    %3 = vector.load %arg2[%c0, %c0_1] : memref<8x32xf32, #tpu.memory_space<vmem>>, vector<8x32xf32>
    %c0_2 = arith.constant 0 : index
    %c0_3 = arith.constant 0 : index
    %4 = vector.load %arg3[%c0_2, %c0_3] : memref<8x32xf32, #tpu.memory_space<vmem>>, vector<8x32xf32>
    %c0_4 = arith.constant 0 : index
    %c0_5 = arith.constant 0 : index
    %5 = vector.load %arg4[%c0_4, %c0_5] : memref<8x1xi32, #tpu.memory_space<vmem>>, vector<8x1xi32>
    %c32_i32 = arith.constant 32 : i32
    %6 = arith.muli %arg1, %c32_i32 : i32
    %7 = tpu.iota {dimensions = array<i32: 1>} : vector<8x32xi32>
    %8 = vector.broadcast %6 : i32 to vector<8x32xi32>
    %9 = arith.addi %8, %7 : vector<8x32xi32>
    %10 = vector.broadcast %5 : vector<8x1xi32> to vector<8x32xi32>
    %11 = arith.cmpi eq, %9, %10 : vector<8x32xi32>
    %12 = arith.subf %4, %3 : vector<8x32xf32>
    %c0_6 = arith.constant 0 : index
    %c0_7 = arith.constant 0 : index
    %13 = vector.load %arg12[%c0_6, %c0_7] : memref<8x1xf32, #tpu.memory_space<vmem>>, vector<8x1xf32>
    %14 = arith.mulf %12, %12 : vector<8x32xf32>
    %cst = arith.constant dense<0.000000e+00> : vector<8xf32>
    %15 = vector.multi_reduction <add>, %14, %cst [1] : vector<8x32xf32> to vector<8xf32>
    %16 = vector.shape_cast %15 : vector<8xf32> to vector<8x1xf32>
    %17 = arith.addf %13, %16 : vector<8x1xf32>
    %c0_8 = arith.constant 0 : index
    %c0_9 = arith.constant 0 : index
    %18 = vector.load %arg12[%c0_8, %c0_9] : memref<8x1xf32, #tpu.memory_space<vmem>>, vector<8x1xf32>
    tpu.vector_store %arg12[%c0_8, %c0_9], %17 {strides = array<i32>} : memref<8x1xf32, #tpu.memory_space<vmem>>, vector<8x1xf32>,
    %c0_10 = arith.constant 0 : index
    %c0_11 = arith.constant 0 : index
    %19 = vector.load %arg6[%c0_10, %c0_11] : memref<8x1xf32, #tpu.memory_space<vmem>>, vector<8x1xf32>
    %cst_12 = arith.constant dense<0.000000e+00> : vector<8xf32>
    %20 = vector.multi_reduction <add>, %3, %cst_12 [1] : vector<8x32xf32> to vector<8xf32>
    %21 = vector.shape_cast %20 : vector<8xf32> to vector<8x1xf32>
    %22 = arith.addf %19, %21 : vector<8x1xf32>
    %c0_13 = arith.constant 0 : index
    %c0_14 = arith.constant 0 : index
    %23 = vector.load %arg6[%c0_13, %c0_14] : memref<8x1xf32, #tpu.memory_space<vmem>>, vector<8x1xf32>
    tpu.vector_store %arg6[%c0_13, %c0_14], %22 {strides = array<i32>} : memref<8x1xf32, #tpu.memory_space<vmem>>, vector<8x1xf32>,
    %c0_15 = arith.constant 0 : index
    %c0_16 = arith.constant 0 : index
    %24 = vector.load %arg7[%c0_15, %c0_16] : memref<8x1xf32, #tpu.memory_space<vmem>>, vector<8x1xf32>
    %25 = arith.mulf %3, %3 : vector<8x32xf32>
    %cst_17 = arith.constant dense<0.000000e+00> : vector<8xf32>
    %26 = vector.multi_reduction <add>, %25, %cst_17 [1] : vector<8x32xf32> to vector<8xf32>
    %27 = vector.shape_cast %26 : vector<8xf32> to vector<8x1xf32>
    %28 = arith.addf %24, %27 : vector<8x1xf32>
    %c0_18 = arith.constant 0 : index
    %c0_19 = arith.constant 0 : index
    %29 = vector.load %arg7[%c0_18, %c0_19] : memref<8x1xf32, #tpu.memory_space<vmem>>, vector<8x1xf32>
    tpu.vector_store %arg7[%c0_18, %c0_19], %28 {strides = array<i32>} : memref<8x1xf32, #tpu.memory_space<vmem>>, vector<8x1xf32>,
    %c0_20 = arith.constant 0 : index
    %c0_21 = arith.constant 0 : index
    %30 = vector.load %arg8[%c0_20, %c0_21] : memref<8x1xf32, #tpu.memory_space<vmem>>, vector<8x1xf32>
    %cst_22 = arith.constant 0.000000e+00 : f32
    %31 = vector.broadcast %cst_22 : f32 to vector<8x32xf32>
    %32 = arith.select %11, %3, %31 : vector<8x32xi1>, vector<8x32xf32>
    %cst_23 = arith.constant dense<0.000000e+00> : vector<8xf32>
    %33 = vector.multi_reduction <add>, %32, %cst_23 [1] : vector<8x32xf32> to vector<8xf32>
    %34 = vector.shape_cast %33 : vector<8xf32> to vector<8x1xf32>
    %35 = arith.addf %30, %34 : vector<8x1xf32>
    %c0_24 = arith.constant 0 : index
    %c0_25 = arith.constant 0 : index
    %36 = vector.load %arg8[%c0_24, %c0_25] : memref<8x1xf32, #tpu.memory_space<vmem>>, vector<8x1xf32>
    tpu.vector_store %arg8[%c0_24, %c0_25], %35 {strides = array<i32>} : memref<8x1xf32, #tpu.memory_space<vmem>>, vector<8x1xf32>,
    %c0_26 = arith.constant 0 : index
    %c0_27 = arith.constant 0 : index
    %37 = vector.load %arg9[%c0_26, %c0_27] : memref<8x1xf32, #tpu.memory_space<vmem>>, vector<8x1xf32>
    %cst_28 = arith.constant dense<0.000000e+00> : vector<8xf32>
    %38 = vector.multi_reduction <add>, %4, %cst_28 [1] : vector<8x32xf32> to vector<8xf32>
    %39 = vector.shape_cast %38 : vector<8xf32> to vector<8x1xf32>
    %40 = arith.addf %37, %39 : vector<8x1xf32>
    %c0_29 = arith.constant 0 : index
    %c0_30 = arith.constant 0 : index
    %41 = vector.load %arg9[%c0_29, %c0_30] : memref<8x1xf32, #tpu.memory_space<vmem>>, vector<8x1xf32>
    tpu.vector_store %arg9[%c0_29, %c0_30], %40 {strides = array<i32>} : memref<8x1xf32, #tpu.memory_space<vmem>>, vector<8x1xf32>,
    %c0_31 = arith.constant 0 : index
    %c0_32 = arith.constant 0 : index
    %42 = vector.load %arg10[%c0_31, %c0_32] : memref<8x1xf32, #tpu.memory_space<vmem>>, vector<8x1xf32>
    %43 = arith.mulf %4, %4 : vector<8x32xf32>
    %cst_33 = arith.constant dense<0.000000e+00> : vector<8xf32>
    %44 = vector.multi_reduction <add>, %43, %cst_33 [1] : vector<8x32xf32> to vector<8xf32>
    %45 = vector.shape_cast %44 : vector<8xf32> to vector<8x1xf32>
    %46 = arith.addf %42, %45 : vector<8x1xf32>
    %c0_34 = arith.constant 0 : index
    %c0_35 = arith.constant 0 : index
    %47 = vector.load %arg10[%c0_34, %c0_35] : memref<8x1xf32, #tpu.memory_space<vmem>>, vector<8x1xf32>
    tpu.vector_store %arg10[%c0_34, %c0_35], %46 {strides = array<i32>} : memref<8x1xf32, #tpu.memory_space<vmem>>, vector<8x1xf32>,
    %c0_36 = arith.constant 0 : index
    %c0_37 = arith.constant 0 : index
    %48 = vector.load %arg11[%c0_36, %c0_37] : memref<8x1xf32, #tpu.memory_space<vmem>>, vector<8x1xf32>
    %cst_38 = arith.constant 0.000000e+00 : f32
    %49 = vector.broadcast %cst_38 : f32 to vector<8x32xf32>
    %50 = arith.select %11, %4, %49 : vector<8x32xi1>, vector<8x32xf32>
    %cst_39 = arith.constant dense<0.000000e+00> : vector<8xf32>
    %51 = vector.multi_reduction <add>, %50, %cst_39 [1] : vector<8x32xf32> to vector<8xf32>
    %52 = vector.shape_cast %51 : vector<8xf32> to vector<8x1xf32>
    %53 = arith.addf %48, %52 : vector<8x1xf32>
    %c0_40 = arith.constant 0 : index
    %c0_41 = arith.constant 0 : index
    %54 = vector.load %arg11[%c0_40, %c0_41] : memref<8x1xf32, #tpu.memory_space<vmem>>, vector<8x1xf32>
    tpu.vector_store %arg11[%c0_40, %c0_41], %53 {strides = array<i32>} : memref<8x1xf32, #tpu.memory_space<vmem>>, vector<8x1xf32>,
    %c0_i32_42 = arith.constant 0 : i32
    %55 = arith.cmpi eq, %arg1, %c0_i32_42 : i32
    %56 = arith.extui %55 : i1 to i32
    %c0_i32_43 = arith.constant 0 : i32
    %57 = arith.cmpi ne, %56, %c0_i32_43 : i32
    scf.if %57 {
      %c0_44 = arith.constant 0 : index
      %c0_45 = arith.constant 0 : index
      %58 = vector.load %arg12[%c0_44, %c0_45] : memref<8x1xf32, #tpu.memory_space<vmem>>, vector<8x1xf32>
      %59 = arith.sitofp %5 : vector<8x1xi32> to vector<8x1xf32>
      %60 = math.sqrt %58 : vector<8x1xf32>
      %cst_46 = arith.constant 1.000000e+00 : f32
      %61 = vector.broadcast %cst_46 : f32 to vector<8x1xf32>
      %62 = arith.subf %61, %60 : vector<8x1xf32>
      %cst_47 = arith.constant 0.000000e+00 : f32
      %63 = vector.broadcast %cst_47 : f32 to vector<8x1xf32>
      %64 = arith.maximumf %62, %63 : vector<8x1xf32>
      %65 = arith.mulf %59, %58 : vector<8x1xf32>
      %cst_48 = arith.constant 1.000000e+00 : f32
      %66 = vector.broadcast %cst_48 : f32 to vector<8x1xf32>
      %67 = arith.subf %66, %59 : vector<8x1xf32>
      %68 = arith.mulf %67, %64 : vector<8x1xf32>
      %69 = arith.mulf %68, %64 : vector<8x1xf32>
      %70 = arith.addf %65, %69 : vector<8x1xf32>
      %cst_49 = arith.constant 5.000000e-01 : f32
      %71 = vector.broadcast %cst_49 : f32 to vector<8x1xf32>
      %72 = arith.mulf %71, %70 : vector<8x1xf32>
      %c-1_i32 = arith.constant -1 : i32
      %73 = vector.broadcast %c-1_i32 : i32 to vector<8x1xi32>
      %74 = arith.cmpi ne, %5, %73 : vector<8x1xi32>
      %75 = arith.extui %74 : vector<8x1xi1> to vector<8x1xi32>
      %76 = arith.sitofp %75 : vector<8x1xi32> to vector<8x1xf32>
      %c0_50 = arith.constant 0 : index
      %c0_51 = arith.constant 0 : index
      %77 = vector.load %arg6[%c0_50, %c0_51] : memref<8x1xf32, #tpu.memory_space<vmem>>, vector<8x1xf32>
      %c0_52 = arith.constant 0 : index
      %c0_53 = arith.constant 0 : index
      %78 = vector.load %arg7[%c0_52, %c0_53] : memref<8x1xf32, #tpu.memory_space<vmem>>, vector<8x1xf32>
      %c0_54 = arith.constant 0 : index
      %c0_55 = arith.constant 0 : index
      %79 = vector.load %arg8[%c0_54, %c0_55] : memref<8x1xf32, #tpu.memory_space<vmem>>, vector<8x1xf32>
      %cst_56 = arith.constant 1.000000e-24 : f32
      %80 = vector.broadcast %cst_56 : f32 to vector<8x1xf32>
      %81 = arith.maximumf %78, %80 : vector<8x1xf32>
      %82 = math.rsqrt %81 : vector<8x1xf32>
      %83 = arith.mulf %79, %82 : vector<8x1xf32>
      %cst_57 = arith.constant 0.87758255 : f32
      %84 = vector.broadcast %cst_57 : f32 to vector<8x1xf32>
      %85 = arith.mulf %83, %84 : vector<8x1xf32>
      %86 = arith.mulf %83, %83 : vector<8x1xf32>
      %cst_58 = arith.constant 1.000000e+00 : f32
      %87 = vector.broadcast %cst_58 : f32 to vector<8x1xf32>
      %88 = arith.subf %87, %86 : vector<8x1xf32>
      %cst_59 = arith.constant 0.000000e+00 : f32
      %89 = vector.broadcast %cst_59 : f32 to vector<8x1xf32>
      %90 = arith.maximumf %88, %89 : vector<8x1xf32>
      %91 = math.sqrt %90 : vector<8x1xf32>
      %cst_60 = arith.constant 0.47942555 : f32
      %92 = vector.broadcast %cst_60 : f32 to vector<8x1xf32>
      %93 = arith.mulf %91, %92 : vector<8x1xf32>
      %94 = arith.subf %85, %93 : vector<8x1xf32>
      %95 = arith.mulf %77, %82 : vector<8x1xf32>
      %96 = arith.subf %94, %83 : vector<8x1xf32>
      %97 = arith.mulf %76, %96 : vector<8x1xf32>
      %98 = arith.addf %95, %97 : vector<8x1xf32>
      %cst_61 = arith.constant 3.000000e+01 : f32
      %99 = vector.broadcast %cst_61 : f32 to vector<8x1xf32>
      %100 = arith.mulf %99, %98 : vector<8x1xf32>
      %c0_62 = arith.constant 0 : index
      %c0_63 = arith.constant 0 : index
      %101 = vector.load %arg9[%c0_62, %c0_63] : memref<8x1xf32, #tpu.memory_space<vmem>>, vector<8x1xf32>
      %c0_64 = arith.constant 0 : index
      %c0_65 = arith.constant 0 : index
      %102 = vector.load %arg10[%c0_64, %c0_65] : memref<8x1xf32, #tpu.memory_space<vmem>>, vector<8x1xf32>
      %c0_66 = arith.constant 0 : index
      %c0_67 = arith.constant 0 : index
      %103 = vector.load %arg11[%c0_66, %c0_67] : memref<8x1xf32, #tpu.memory_space<vmem>>, vector<8x1xf32>
      %cst_68 = arith.constant 1.000000e-24 : f32
      %104 = vector.broadcast %cst_68 : f32 to vector<8x1xf32>
      %105 = arith.maximumf %102, %104 : vector<8x1xf32>
      %106 = math.rsqrt %105 : vector<8x1xf32>
      %107 = arith.mulf %103, %106 : vector<8x1xf32>
      %cst_69 = arith.constant 0.87758255 : f32
      %108 = vector.broadcast %cst_69 : f32 to vector<8x1xf32>
      %109 = arith.mulf %107, %108 : vector<8x1xf32>
      %110 = arith.mulf %107, %107 : vector<8x1xf32>
      %cst_70 = arith.constant 1.000000e+00 : f32
      %111 = vector.broadcast %cst_70 : f32 to vector<8x1xf32>
      %112 = arith.subf %111, %110 : vector<8x1xf32>
      %cst_71 = arith.constant 0.000000e+00 : f32
      %113 = vector.broadcast %cst_71 : f32 to vector<8x1xf32>
      %114 = arith.maximumf %112, %113 : vector<8x1xf32>
      %115 = math.sqrt %114 : vector<8x1xf32>
      %cst_72 = arith.constant 0.47942555 : f32
      %116 = vector.broadcast %cst_72 : f32 to vector<8x1xf32>
      %117 = arith.mulf %115, %116 : vector<8x1xf32>
      %118 = arith.subf %109, %117 : vector<8x1xf32>
      %119 = arith.mulf %101, %106 : vector<8x1xf32>
      %120 = arith.subf %118, %107 : vector<8x1xf32>
      %121 = arith.mulf %76, %120 : vector<8x1xf32>
      %122 = arith.addf %119, %121 : vector<8x1xf32>
      %cst_73 = arith.constant 3.000000e+01 : f32
      %123 = vector.broadcast %cst_73 : f32 to vector<8x1xf32>
      %124 = arith.mulf %123, %122 : vector<8x1xf32>
      %125 = arith.addf %100, %124 : vector<8x1xf32>
      %cst_74 = arith.constant 1.250000e-01 : f32
      %126 = vector.broadcast %cst_74 : f32 to vector<8x1xf32>
      %127 = arith.mulf %72, %126 : vector<8x1xf32>
      %cst_75 = arith.constant 0.001953125 : f32
      %128 = vector.broadcast %cst_75 : f32 to vector<8x1xf32>
      %129 = arith.mulf %125, %128 : vector<8x1xf32>
      %130 = arith.addf %127, %129 : vector<8x1xf32>
      %131 = vector.shape_cast %130 : vector<8x1xf32> to vector<1x8x1xf32>
      %cst_76 = arith.constant dense<0.000000e+00> : vector<1xf32>
      %132 = vector.multi_reduction <add>, %131, %cst_76 [1, 2] : vector<1x8x1xf32> to vector<1xf32>
      %133 = vector.shape_cast %132 : vector<1xf32> to vector<1x1x1xf32>
      %134 = vector.extract %133[0, 0, 0] : f32 from vector<1x1x1xf32>
      %135 = vector.broadcast %134 : f32 to vector<1x1xf32>
      %136 = vector.shape_cast %135 : vector<1x1xf32> to vector<1x1x1xf32>
      %137 = vector.shape_cast %136 : vector<1x1x1xf32> to vector<1x1x1xf32>
      %138 = vector.broadcast %137 : vector<1x1x1xf32> to vector<1x8x128xf32>
      %c0_77 = arith.constant 0 : index
      %c0_78 = arith.constant 0 : index
      %c0_79 = arith.constant 0 : index
      %139 = vector.load %arg5[%c0_77, %c0_78, %c0_79] : memref<1x8x128xf32, #tpu.memory_space<vmem>>, vector<1x8x128xf32>
      tpu.vector_store %arg5[%c0_77, %c0_78, %c0_79], %138 {strides = array<i32>} : memref<1x8x128xf32, #tpu.memory_space<vmem>>, vector<1x8x128xf32>,
    } else {
    }
    return
  }
  func.func @transform_0(%arg0: i32, %arg1: i32) -> (i32, i32) {
    %c0_i32 = arith.constant 0 : i32
    return %arg0, %arg1 : i32, i32
  }
  func.func @transform_1(%arg0: i32, %arg1: i32) -> (i32, i32) {
    %c0_i32 = arith.constant 0 : i32
    return %arg0, %arg1 : i32, i32
  }
  func.func @transform_2(%arg0: i32, %arg1: i32) -> (i32, i32) {
    %c0_i32 = arith.constant 0 : i32
    %c0_i32_0 = arith.constant 0 : i32
    return %arg0, %c0_i32 : i32, i32
  }
  func.func @transform_3(%arg0: i32, %arg1: i32) -> (i32, i32, i32) {
    %c0_i32 = arith.constant 0 : i32
    %c0_i32_0 = arith.constant 0 : i32
    %c0_i32_1 = arith.constant 0 : i32
    return %arg0, %c0_i32, %c0_i32_0 : i32, i32, i32
  }
}

</mosaic_0001>

<bundles_post_ra>
// kernel: tpu_custom_call.1
= control target key start
LH: loop header
LB: loop body
LE: loop exit
PB: predicated region body
PF: predicated region fallthrough
CT: control target
= control target key end

     0   :  { %8 = vsyncpa [#allocation10], 0  ;;  %s336_s0 = inlined_call_operand.vmem [shape: f32[8,32], index: 0, kind: input, shape index: {}]   ;;  %s337_s1 = inlined_call_operand.hbm [shape: f32[8,32], index: 1, kind: input, shape index: {}]   ;;  %s338_s2 = inlined_call_operand.vmem [shape: s32[8,1], index: 2, kind: input, shape index: {}]   ;;  %s339_s3 = inlined_call_operand.hbm [shape: f32[1,8,128], index: 3, kind: output, shape index: {}]  }
   0x1   :  { %9 = vsyncpa [#allocation11], 0  ;;  %s265_s12 = smov [#allocation9]  }
   0x2   :  { %s18_s13 = sshll.u32 %s265_s12, 4  ;;  %s19_s13 = int_to_ptr.vmem [resolvable:$true] %s18_s13 }
   0x3   :  { %s229_s14 = scalar_lea.vmem %s19_s13, 128  ;;  %p234_p1 = scmp.lt.s32.totalorder %s19_s13, %s19_s13 }
   0x4   :  { %p230_p0 = scmp.ne.s32.totalorder %s19_s13, %s229_s14  ;;  %p235_p2 = scmp.lt.s32.totalorder %s229_s14, %s229_s14 }
   0x6   :  { %p236_p3 = por %p235_p2, %p234_p1 }
   0x8   :  { %p237_p4 = pnand %p236_p3, %p230_p0 }
   0xa   :  { %240 = shalt.err (!%p237_p4)
}
   0xb   :  { %21 = dma.hbm_to_vmem [thread:$0]  %s337_s1, 128, %s19_s13, [#allocation10]  }
   0xc   :  { %261 = dma.done.wait [#allocation10], 128  }
   0xd   :  { %262 = vsyncadd [#allocation10], 4294967168  ;;  %v266_v0 = vmov 0   ;;  %v295_v1 = vld [vmem:[%s338_s2] sm:$0xff]  ;;  %v40_v2 = vld [vmem:[#allocation9] sm:$0xff]  ;;  %v267_v4 = vmov 0.0   ;;  %v43_v10 = vlaneseq }
   0xe   :  { %210 = vset.pattern.permute.xlu0 %v266_v0  ;;  %vm121_vm0 = vcmp.ne.s32.totalorder %v295_v1, 4294967295  ;;  %v88_v3 = vmul.f32 %v40_v2, %v40_v2  ;;  %vm54_vm1 = vcmask 261120   ;;  %vm31_vm2 = vcmask 7168   ;;  %v39_v7 = vld [vmem:[%s336_s0] sm:$0xff]  ;;  %s268_s0 = smov [#allocation12]  }
   0xf   :  { %48 = vperm.xlu0 %210, %v295_v1   ;;  %v299_v5 = vsel %vm121_vm0, 1.0, %v267_v4  ;;  %33 = vst.msk [vmem:[#allocation3] sm:$0xff] %vm31_vm2, %v267_v4  ;;  %32 = vst.msk [vmem:[#allocation2] sm:$0xff] %vm31_vm2, %v267_v4  ;;  %v68_v8 = vmul.f32 %v39_v7, %v39_v7  ;;  %v44_v11 = vand.u32 127, %v43_v10  ;;  %v51_v13 = vsub.f32 %v40_v2, %v39_v7  ;;  %s194_s19 = sshll.u32 %s268_s0, 4  ;;  %s195_s19 = int_to_ptr.vmem [resolvable:$true] %s194_s19 }
  0x10   :  { %v89_v6 = vsel %vm54_vm1, %v88_v3, 0.0  ;;  %34 = vst.msk [vmem:[#allocation4] sm:$0xff] %vm31_vm2, %v267_v4  ;;  %35 = vst.msk [vmem:[#allocation5] sm:$0xff] %vm31_vm2, %v267_v4  ;;  %v62_v20 = vsel %vm54_vm1, %v39_v7, 0.0  ;;  %v82_v22 = vsel %vm54_vm1, %v40_v2, 0.0  ;;  %v105_v63 = vcvt.s32.f32 %v295_v1  ;;  %s241_s21 = scalar_lea.vmem %s195_s19, 128  ;;  %p246_p6 = scmp.lt.s32.totalorder %s195_s19, %s195_s19 }
  0x11   :  { %90 = vadd.xlane.f32.xlu1 %v89_v6  ;;  %36 = vst.msk [vmem:[#allocation6] sm:$0xff] %vm31_vm2, %v267_v4  ;;  %37 = vst.msk [vmem:[#allocation7] sm:$0xff] %vm31_vm2, %v267_v4  ;;  %v69_v9 = vsel %vm54_vm1, %v68_v8, 0.0  ;;  %v53_v17 = vmul.f32 %v51_v13, %v51_v13  ;;  %p242_p5 = scmp.ne.s32.totalorder %s195_s19, %s241_s21  ;;  %p247_p7 = scmp.lt.s32.totalorder %s241_s21, %s241_s21 }
  0x12   :  { %38 = vst.msk [vmem:[#allocation8] sm:$0xff] %vm31_vm2, %v267_v4  ;;  %v116_v8 = vsub.f32 1.0, %v105_v63 }
  0x13   :  { %v55_v19 = vsel %vm54_vm1, %v53_v17, 0.0  ;;  %p248_p8 = por %p247_p7, %p246_p6 }
  0x15   :  { %p249_p9 = pnand %p248_p8, %p242_p5 }
  0x16   :  { %v67_v25 = vld [vmem:[#allocation3] sm:$0xff]  ;;  %v61_v42 = vld [vmem:[#allocation2] sm:$0xff] }
  0x17   :  { %v74_v32 = vld [vmem:[#allocation4] sm:$0xff]  ;;  %v81_v49 = vld [vmem:[#allocation5] sm:$0xff] }
  0x18   :  { %v87_v21 = vld [vmem:[#allocation6] sm:$0xff]  ;;  %v94_v35 = vld [vmem:[#allocation7] sm:$0xff] }
  0x19   :  { %v52_v38 = vld [vmem:[#allocation8] sm:$0xff] }
  0x2e   :  { %70 = vadd.xlane.f32.xlu0 %v69_v9 }
  0x8a   :  { %v49_v12 = vpop.permute.xlu0 %48 }
  0x8b   :  { %vm50_vm3 = vcmp.eq.s32.totalorder %v44_v11, %v49_v12 }
  0x8c   :  { %v75_v14 = vsel %vm50_vm3, %v39_v7, 0.0  ;;  %v95_v16 = vsel %vm50_vm3, %v40_v2, 0.0 }
  0x8d   :  { %v76_v15 = vsel %vm54_vm1, %v75_v14, 0.0  ;;  %v96_v18 = vsel %vm54_vm1, %v95_v16, 0.0 }
  0x8e   :  { %77 = vadd.xlane.f32.xlu1 %v76_v15 }
  0x92   :  { %97 = vadd.xlane.f32.xlu1 %v96_v18 }
  0x96   :  { %56 = vadd.xlane.f32.xlu1 %v55_v19 }
  0x9a   :  { %63 = vadd.xlane.f32.xlu1 %v62_v20  ;;  %v91_v23 = vpop.xlane.xlu1 %90 }
  0x9b   :  { %v92_v24 = vadd.f32 %v91_v23, %v87_v21 }
  0x9d   :  { %93 = vst.msk [vmem:[#allocation6] sm:$0xff] %vm31_vm2, %v92_v24 }
  0x9e   :  { %83 = vadd.xlane.f32.xlu1 %v82_v22 }
  0xa4   :  { %v149_v30 = vld [vmem:[#allocation6] sm:$0xff] }
  0xa5   :  { %v151_v31 = vmax.f32 %v149_v30, 1e-24 }
  0xb7   :  { %v71_v26 = vpop.xlane.xlu0 %70 }
  0xb8   :  { %v72_v27 = vadd.f32 %v71_v26, %v67_v25 }
  0xba   :  { %73 = vst.msk [vmem:[#allocation3] sm:$0xff] %vm31_vm2, %v72_v27 }
  0xc1   :  { %v125_v28 = vld [vmem:[#allocation3] sm:$0xff] }
  0xc2   :  { %v127_v29 = vmax.f32 %v125_v28, 1e-24 }
  0xc4   :  { %211 = vrsqrt.f32 %v127_v29 }
  0xc5   :  { %213 = vrsqrt.f32 %v151_v31 }
  0xd1   :  { %v322_v39 = vpop.eup %211 }
  0xd2   :  { %v214_v45 = vpop.eup %213 }
 0x117   :  { %v78_v33 = vpop.xlane.xlu1 %77 }
 0x118   :  { %v79_v34 = vadd.f32 %v78_v33, %v74_v32 }
 0x11a   :  { %80 = vst.msk [vmem:[#allocation4] sm:$0xff] %vm31_vm2, %v79_v34 }
 0x11b   :  { %v98_v36 = vpop.xlane.xlu1 %97 }
 0x11c   :  { %v99_v37 = vadd.f32 %v98_v36, %v94_v35 }
 0x11e   :  { %100 = vst.msk [vmem:[#allocation7] sm:$0xff] %vm31_vm2, %v99_v37 }
 0x11f   :  { %v57_v40 = vpop.xlane.xlu1 %56 }
 0x120   :  { %v58_v41 = vadd.f32 %v57_v40, %v52_v38 }
 0x121   :  { %v126_v43 = vld [vmem:[#allocation4] sm:$0xff] }
 0x122   :  { %60 = vst.msk [vmem:[#allocation8] sm:$0xff] %vm31_vm2, %v58_v41  ;;  %v129_v44 = vmul.f32 %v322_v39, %v126_v43 }
 0x123   :  { %v64_v46 = vpop.xlane.xlu1 %63 }
 0x124   :  { %v65_v47 = vadd.f32 %v64_v46, %v61_v42  ;;  %v131_v48 = vmul.f32 %v129_v44, %v129_v44  ;;  %v130_v12 = vmul.f32 0.87758255, %v129_v44 }
 0x125   :  { %v150_v50 = vld [vmem:[#allocation7] sm:$0xff] }
 0x126   :  { %66 = vst.msk [vmem:[#allocation2] sm:$0xff] %vm31_vm2, %v65_v47  ;;  %v132_v51 = vsub.f32 1.0, %v131_v48  ;;  %v153_v52 = vmul.f32 %v214_v45, %v150_v50 }
 0x127   :  { %v84_v53 = vpop.xlane.xlu1 %83 }
 0x128   :  { %v85_v54 = vadd.f32 %v84_v53, %v81_v49  ;;  %v133_v55 = vmax.f32 %v132_v51, 0.0  ;;  %v155_v56 = vmul.f32 %v153_v52, %v153_v52  ;;  %v154_v21 = vmul.f32 0.87758255, %v153_v52 }
 0x129   :  { %v104_v57 = vld [vmem:[#allocation8] sm:$0xff] }
 0x12a   :  { %86 = vst.msk [vmem:[#allocation5] sm:$0xff] %vm31_vm2, %v85_v54  ;;  %215 = vrsqrt.f32 %v104_v57  ;;  %v156_v58 = vsub.f32 1.0, %v155_v56  ;;  %vm108_vm4 = vcmp.eq.f32.partialorder %v104_v57, inf  ;;  %v111_v0 = vand.u32 2147483648, %v104_v57 }
 0x12b   :  { %217 = vrsqrt.f32 %v133_v55  ;;  %vm110_vm5 = vcmp.eq.f32.partialorder %v104_v57, 0.0  ;;  %vm136_vm6 = vcmp.eq.f32.partialorder %v133_v55, inf  ;;  %v139_v4 = vand.u32 2147483648, %v133_v55 }
 0x12c   :  { %v157_v59 = vmax.f32 %v156_v58, 0.0  ;;  %vm138_vm7 = vcmp.eq.f32.partialorder %v133_v55, 0.0  ;;  %v115_v28 = vmul.f32 %v105_v63, %v104_v57 }
 0x12d   :  { %v124_v23 = vld [vmem:[#allocation2] sm:$0xff] }
 0x12e   :  { %219 = vrsqrt.f32 %v157_v59  ;;  %vm160_vm8 = vcmp.eq.f32.partialorder %v157_v59, inf  ;;  %v163_v1 = vand.u32 2147483648, %v157_v59  ;;  %vm162_vm9 = vcmp.eq.f32.partialorder %v157_v59, 0.0 }
 0x12f   :  { %v143_v29 = vmul.f32 %v322_v39, %v124_v23 }
 0x131   :  { %v148_v27 = vld [vmem:[#allocation5] sm:$0xff] }
 0x132   :  { %v167_v33 = vmul.f32 %v214_v45, %v148_v27 }
 0x137   :  { %v216_v60 = vpop.eup %215 }
 0x138   :  { %v218_v61 = vpop.eup %217  ;;  %v107_v62 = vmul.f32 %v216_v60, %v104_v57 }
 0x139   :  { %v135_v2 = vmul.f32 %v218_v61, %v133_v55 }
 0x13a   :  { %v109_v3 = vsel %vm108_vm4, %v104_v57, %v107_v62 }
 0x13b   :  { %v112_v6 = vsel %vm110_vm5, %v111_v0, %v109_v3  ;;  %v137_v7 = vsel %vm136_vm6, %v133_v55, %v135_v2  ;;  %v220_v11 = vpop.eup %219 }
 0x13c   :  { %v113_v9 = vsub.f32 1.0, %v112_v6  ;;  %v140_v10 = vsel %vm138_vm7, %v139_v4, %v137_v7  ;;  %v159_v15 = vmul.f32 %v220_v11, %v157_v59 }
 0x13d   :  { %v141_v13 = vmul.f32 0.47942555, %v140_v10 }
 0x13e   :  { %v114_v14 = vmax.f32 %v113_v9, 0.0  ;;  %v161_v18 = vsel %vm160_vm8, %v157_v59, %v159_v15 }
 0x13f   :  { %v142_v16 = vsub.f32 %v130_v12, %v141_v13  ;;  %v164_v20 = vsel %vm162_vm9, %v163_v1, %v161_v18 }
 0x140   :  { %v117_v17 = vmul.f32 %v116_v8, %v114_v14  ;;  %v165_v22 = vmul.f32 0.47942555, %v164_v20 }
 0x141   :  { %v144_v19 = vsub.f32 %v142_v16, %v129_v44 }
 0x142   :  { %v118_v24 = vmul.f32 %v117_v17, %v114_v14  ;;  %v166_v26 = vsub.f32 %v154_v21, %v165_v22 }
 0x143   :  { %v145_v25 = vmul.f32 %v299_v5, %v144_v19 }
 0x144   :  { %v168_v30 = vsub.f32 %v166_v26, %v153_v52  ;;  %v119_v31 = vadd.f32 %v118_v24, %v115_v28 }
 0x145   :  { %v146_v32 = vadd.f32 %v145_v25, %v143_v29 }
 0x146   :  { %v169_v34 = vmul.f32 %v299_v5, %v168_v30  ;;  %v120_v36 = vmul.f32 0.5, %v119_v31 }
 0x147   :  { %v147_v37 = vmul.f32 30.0, %v146_v32 }
 0x148   :  { %v170_v35 = vadd.f32 %v169_v34, %v167_v33  ;;  %v173_v41 = vmul.f32 0.125, %v120_v36 }
 0x14a   :  { %v171_v38 = vmul.f32 30.0, %v170_v35 }
 0x14c   :  { %v172_v40 = vadd.f32 %v171_v38, %v147_v37 }
 0x14e   :  { %v174_v42 = vmul.f32 0.001953125, %v172_v40 }
 0x150   :  { %v175_v43 = vadd.f32 %v174_v42, %v173_v41 }
 0x152   :  { %v176_v44 = vsel %vm31_vm2, %v175_v43, 0.0 }
 0x153   :  { %177 = vadd.xlane.f32.xlu1 %v176_v44 }
 0x1dc   :  { %v178_v46 = vpop.xlane.xlu1 %177 }
 0x1dd   :  { %v179_v47 = vrot.slane %v178_v46, 4 }
 0x1df   :  { %v180_v39 = vadd.f32 %v179_v47, %v178_v46 }
 0x1e1   :  { %v181_v48 = vrot.slane %v180_v39, 2 }
 0x1e3   :  { %v182_v49 = vadd.f32 %v181_v48, %v180_v39 }
 0x1e5   :  { %v183_v50 = vrot.slane %v182_v49, 1 }
 0x1e7   :  { %v184_v45 = vadd.f32 %v183_v50, %v182_v49 }
 0x1e9   :  { %204 = vpush %v184_v45 }
 0x21a   :  { %s205_s20 = spop %204 }
 0x21b   :  { %v186_v5 = vstv %s205_s20 }
 0x21c   :  { %187 = vst [vmem:[#allocation12] sm:$0xff] %v186_v5 }
 0x21d   :  { %252 = shalt.err (!%p249_p9)
}
 0x21e   :  { %197 = dma.vmem_to_hbm [thread:$0]  %s195_s19, 128, %s339_s3, [#allocation11]  }
 0x21f   :  { %263 = dma.done.wait [#allocation11], 128  }
 0x220   :  { %264 = vsyncadd [#allocation11], 4294967168 }
 0x221   :  { %201 = vsyncpa [#allocation10], 1 }
 0x222   :  { %202 = vsyncpa [#allocation11], 1 }

</bundles_post_ra>
